<compile_context>
chip_gen: v6e
topology: v6e:2x2x1
jax: 0.10.0
libtpu: 0.0.40
codegen_flags: <defaults>
</compile_context>

<pallas_src>
import functools

import jax
import jax.numpy as jnp
from jax.experimental import pallas as pl
from jax.experimental.pallas import tpu as pltpu

LANE = 128  # TPU vreg lane width


def _encoder_kernel(x_ref, w1_ref, b1_ref, w2_ref, gamma_ref, beta_ref, o_ref,
                    *, n_per_problem):
    """One grid step = Bt stacked problems of n_per_problem rows each.

    x_ref:  (Bt*N, D)   bf16   (D unpadded, = 32 here)
    w1_ref: (D, DP)     bf16   (out lanes padded to 128)
    b1_ref: (1, DP)     f32
    w2_ref: (DP, HP)    bf16   (rows >= D and cols >= H are zero)
    gamma/beta: (1, HP) f32
    o_ref:  (Bt*N, HP)  f32    lane-dense store
    """
    n = n_per_problem
    bt = x_ref.shape[0] // n

    # el1: Linear(D, D) + ReLU  (bf16 MXU matmul, f32 accumulate / elementwise)
    h = jnp.dot(x_ref[...], w1_ref[...], preferred_element_type=jnp.float32)
    h = jnp.maximum(h + b1_ref[...], 0.0)

    # el2: Linear(D, H)  -- bias intentionally dropped: the BatchNorm mean
    # subtraction cancels a per-feature constant exactly.
    y = jnp.dot(h.astype(w2_ref.dtype), w2_ref[...],
                preferred_element_type=jnp.float32)

    gamma = gamma_ref[...]
    beta = beta_ref[...]

    # en2: BatchNorm1d, training-mode batch statistics computed per problem
    # (each contiguous N-row group).  bt is tiny and static -> unrolled.
    for i in range(bt):
        yi = y[i * n:(i + 1) * n, :]                         # sublane-aligned slice
        mean = jnp.mean(yi, axis=0, keepdims=True)           # (1, HP)
        mean_sq = jnp.mean(yi * yi, axis=0, keepdims=True)
        var = jnp.maximum(mean_sq - mean * mean, 0.0)        # clamp single-pass var
        scale = gamma * jax.lax.rsqrt(var + 1e-5)            # EUP rsqrt
        shift = beta - mean * scale
        o_ref[i * n:(i + 1) * n, :] = yi * scale + shift     # one FMA epilogue


def pad_encoder_params(w1, b1, w2, gamma, beta):
    """Pad static parameters ONCE (call outside the per-step path).

    Only output lane dims are padded to 128; the x contraction dim stays at D.
    Padded weight rows/cols and biases are zero, gamma padding is 1, so padded
    output columns are exact zeros and get sliced off by the wrapper.
    b2 is not needed (cancelled by training-mode BatchNorm).
    """
    D = w1.shape[0]
    H = w2.shape[1]
    DP = pl.cdiv(D, LANE) * LANE
    HP = pl.cdiv(H, LANE) * LANE
    w1p = jnp.zeros((D, DP), jnp.bfloat16).at[:, :D].set(w1.astype(jnp.bfloat16))
    b1p = jnp.zeros((1, DP), jnp.float32).at[:, :D].set(b1.astype(jnp.float32))
    w2p = jnp.zeros((DP, HP), jnp.bfloat16).at[:D, :H].set(w2.astype(jnp.bfloat16))
    gp = jnp.ones((1, HP), jnp.float32).at[:, :H].set(gamma.astype(jnp.float32))
    bp = jnp.zeros((1, HP), jnp.float32).at[:, :H].set(beta.astype(jnp.float32))
    return w1p, b1p, w2p, gp, bp


@functools.partial(jax.jit, static_argnames=("hidden_dim",))
def encoder_forward(x, w1p, b1p, w2p, gp, bp, *, hidden_dim):
    """x: (B, N, D) = B independent Encoder invocations, each an (N, D) batch.

    Each grid step runs Bt = B/num_steps whole problems so every problem gets
    its own BatchNorm batch statistics; num_steps >= 2 when B is even so v7x's
    two TensorCores are both used.
    """
    B, N, D = x.shape
    DP = w1p.shape[1]
    HP = w2p.shape[1]
    assert w1p.shape[0] == D

    num_steps = 2 if (B % 2 == 0 and B >= 2) else 1
    rows = B * N
    rows_per_step = rows // num_steps
    assert rows_per_step % 8 == 0, "block rows must be sublane-tile aligned"
    assert rows_per_step % N == 0, "each step must hold whole problems"

    # Only per-call work on x: cast to bf16 and flatten problems onto rows
    # (free, contiguous reshape).
    x2 = x.astype(jnp.bfloat16).reshape(rows, D)

    kernel = functools.partial(_encoder_kernel, n_per_problem=N)

    out2 = pl.pallas_call(
        kernel,
        out_shape=jax.ShapeDtypeStruct((rows, HP), jnp.float32),
        grid_spec=pltpu.PrefetchScalarGridSpec(
            num_scalar_prefetch=0,
            grid=(num_steps,),
            in_specs=[
                # per-step activation block (D = full array dim -> legal)
                pl.BlockSpec((rows_per_step, D), lambda s: (s, 0)),
                # weights / bias / BN params: constant block index -> DMA'd
                # once, VMEM-resident across all grid steps
                pl.BlockSpec((D, DP), lambda s: (0, 0)),
                pl.BlockSpec((1, DP), lambda s: (0, 0)),
                pl.BlockSpec((DP, HP), lambda s: (0, 0)),
                pl.BlockSpec((1, HP), lambda s: (0, 0)),
                pl.BlockSpec((1, HP), lambda s: (0, 0)),
            ],
            out_specs=pl.BlockSpec((rows_per_step, HP), lambda s: (s, 0)),
        ),
        compiler_params=pltpu.CompilerParams(
            dimension_semantics=("parallel",),  # shard steps across TCs on v7x
        ),
    )(x2, w1p, b1p, w2p, gp, bp)

    return out2.reshape(B, N, HP)[:, :, :hidden_dim]


def reference_forward_f32(x, w1, b1, w2, b2, gamma, beta):
    """Pure-f32 reference (per-problem training-mode BatchNorm), includes b2."""
    h = jnp.maximum(jnp.einsum("bnd,de->bne", x, w1) + b1, 0.0)
    y = jnp.einsum("bne,eh->bnh", h, w2) + b2
    mean = jnp.mean(y, axis=1, keepdims=True)
    var = jnp.mean((y - mean) ** 2, axis=1, keepdims=True)
    return gamma * (y - mean) / jnp.sqrt(var + 1e-5) + beta


def reference_forward_bf16(x, w1, b1, w2, b2, gamma, beta):
    """Matched-precision reference (bf16 matmul operands, f32 everything else)."""
    h = jnp.einsum("bnd,de->bne", x.astype(jnp.bfloat16), w1.astype(jnp.bfloat16),
                   preferred_element_type=jnp.float32) + b1
    h = jnp.maximum(h, 0.0)
    y = jnp.einsum("bne,eh->bnh", h.astype(jnp.bfloat16), w2.astype(jnp.bfloat16),
                   preferred_element_type=jnp.float32) + b2
    mean = jnp.mean(y, axis=1, keepdims=True)
    var = jnp.mean((y - mean) ** 2, axis=1, keepdims=True)
    return gamma * (y - mean) / jnp.sqrt(var + 1e-5) + beta


if __name__ == "__main__":
    num_problems, batch, input_dim, hidden_dim = 4, 8, 32, 16

    key = jax.random.PRNGKey(0)
    kx, k1w, k1b, k2w, k2b, kg, kb = jax.random.split(key, 7)

    # B stacked independent encoder inputs, each (batch, input_dim).
    x = jax.random.normal(kx, (num_problems, batch, input_dim), dtype=jnp.float32)

    # Deterministic parameter init (uniform like nn.Linear's default bound).
    bound1 = 1.0 / (input_dim ** 0.5)
    w1 = jax.random.uniform(k1w, (input_dim, input_dim), jnp.float32, -bound1, bound1)
    b1 = jax.random.uniform(k1b, (1, input_dim), jnp.float32, -bound1, bound1)
    w2 = jax.random.uniform(k2w, (input_dim, hidden_dim), jnp.float32, -bound1, bound1)
    b2 = jax.random.uniform(k2b, (1, hidden_dim), jnp.float32, -bound1, bound1)
    # BatchNorm1d affine params (default init ones/zeros; perturb deterministically).
    gamma = jnp.ones((1, hidden_dim), jnp.float32) + 0.1 * jax.random.normal(kg, (1, hidden_dim))
    beta = 0.1 * jax.random.normal(kb, (1, hidden_dim))

    # Static padding hoisted out of the per-call path: pad once, reuse.
    params = pad_encoder_params(w1, b1, w2, gamma, beta)
    params = jax.block_until_ready(params)

    out = encoder_forward(x, *params, hidden_dim=hidden_dim)
    out = jax.block_until_ready(out)
    assert out.shape == (num_problems, batch, hidden_dim)

    # Tight check against the matched-precision (bf16-matmul) reference.
    # The references include b2; the kernel drops it (BN mean cancels it).
    ref_bf16 = reference_forward_bf16(x, w1, b1, w2, b2, gamma, beta)
    assert jnp.allclose(out, ref_bf16, atol=2e-3, rtol=2e-3), "mismatch vs bf16 reference"

    # Loose check against the full-f32 module semantics (bf16 matmul error only).
    ref_f32 = reference_forward_f32(x, w1, b1, w2, b2, gamma, beta)
    assert jnp.allclose(out, ref_f32, atol=5e-2, rtol=5e-2), "mismatch vs f32 reference"

    print("KERNEL_OK")
</pallas_src>

<mosaic_0001>
module attributes {stable_mosaic.version = 11 : i64} {
  func.func @_encoder_kernel(%arg0: i32, %arg1: memref<16x32xbf16, #tpu.memory_space<vmem>>, %arg2: memref<32x128xbf16, #tpu.memory_space<vmem>>, %arg3: memref<1x128xf32, #tpu.memory_space<vmem>>, %arg4: memref<128x128xbf16, #tpu.memory_space<vmem>>, %arg5: memref<1x128xf32, #tpu.memory_space<vmem>>, %arg6: memref<1x128xf32, #tpu.memory_space<vmem>>, %arg7: memref<16x128xf32, #tpu.memory_space<vmem>>) attributes {dimension_semantics = [#tpu.dimension_semantics<parallel>], iteration_bounds = array<i64: 2>, scalar_prefetch = 0 : i64, scratch_operands = 0 : i64, tpu.core_type = #tpu.core_type<tc>, window_params = [{transform_indices = @transform_0, window_bounds = array<i64: 16, 32>}, {pipeline_mode = #tpu.pipeline_mode<synchronous>, transform_indices = @transform_1, window_bounds = array<i64: 32, 128>}, {pipeline_mode = #tpu.pipeline_mode<synchronous>, transform_indices = @transform_2, window_bounds = array<i64: 1, 128>}, {pipeline_mode = #tpu.pipeline_mode<synchronous>, transform_indices = @transform_3, window_bounds = array<i64: 128, 128>}, {pipeline_mode = #tpu.pipeline_mode<synchronous>, transform_indices = @transform_4, window_bounds = array<i64: 1, 128>}, {pipeline_mode = #tpu.pipeline_mode<synchronous>, transform_indices = @transform_5, window_bounds = array<i64: 1, 128>}, {transform_indices = @transform_6, window_bounds = array<i64: 16, 128>}]} {
    %c0 = arith.constant 0 : index
    %c0_0 = arith.constant 0 : index
    %0 = vector.load %arg1[%c0, %c0_0] : memref<16x32xbf16, #tpu.memory_space<vmem>>, vector<16x32xbf16>
    %c0_1 = arith.constant 0 : index
    %c0_2 = arith.constant 0 : index
    %1 = vector.load %arg2[%c0_1, %c0_2] : memref<32x128xbf16, #tpu.memory_space<vmem>>, vector<32x128xbf16>
    %cst = arith.constant dense<0.000000e+00> : vector<16x128xf32>
    %2 = tpu.matmul %0, %1, %cst {dimension_numbers = #tpu.dot_dimension_numbers<[1], [0], [0], [1], [0, 0, 1, 1], [], []>} : vector<16x32xbf16>, vector<32x128xbf16>, vector<16x128xf32> -> vector<16x128xf32>
    %c0_3 = arith.constant 0 : index
    %c0_4 = arith.constant 0 : index
    %3 = vector.load %arg3[%c0_3, %c0_4] : memref<1x128xf32, #tpu.memory_space<vmem>>, vector<1x128xf32>
    %4 = vector.broadcast %3 : vector<1x128xf32> to vector<16x128xf32>
    %5 = arith.addf %2, %4 : vector<16x128xf32>
    %cst_5 = arith.constant 0.000000e+00 : f32
    %6 = vector.broadcast %cst_5 : f32 to vector<16x128xf32>
    %7 = arith.maximumf %5, %6 : vector<16x128xf32>
    %8 = arith.truncf %7 : vector<16x128xf32> to vector<16x128xbf16>
    %c0_6 = arith.constant 0 : index
    %c0_7 = arith.constant 0 : index
    %9 = vector.load %arg4[%c0_6, %c0_7] : memref<128x128xbf16, #tpu.memory_space<vmem>>, vector<128x128xbf16>
    %cst_8 = arith.constant dense<0.000000e+00> : vector<16x128xf32>
    %10 = tpu.matmul %8, %9, %cst_8 {dimension_numbers = #tpu.dot_dimension_numbers<[1], [0], [0], [1], [0, 0, 1, 1], [], []>} : vector<16x128xbf16>, vector<128x128xbf16>, vector<16x128xf32> -> vector<16x128xf32>
    %c0_9 = arith.constant 0 : index
    %c0_10 = arith.constant 0 : index
    %11 = vector.load %arg5[%c0_9, %c0_10] : memref<1x128xf32, #tpu.memory_space<vmem>>, vector<1x128xf32>
    %c0_11 = arith.constant 0 : index
    %c0_12 = arith.constant 0 : index
    %12 = vector.load %arg6[%c0_11, %c0_12] : memref<1x128xf32, #tpu.memory_space<vmem>>, vector<1x128xf32>
    %13 = vector.extract_strided_slice %10 {offsets = [0, 0], sizes = [8, 128], strides = [1, 1]} : vector<16x128xf32> to vector<8x128xf32>
    %cst_13 = arith.constant dense<0.000000e+00> : vector<128xf32>
    %14 = vector.multi_reduction <add>, %13, %cst_13 [0] : vector<8x128xf32> to vector<128xf32>
    %15 = vector.shape_cast %14 : vector<128xf32> to vector<1x128xf32>
    %cst_14 = arith.constant 8.000000e+00 : f32
    %16 = vector.broadcast %cst_14 : f32 to vector<1x128xf32>
    %17 = arith.divf %15, %16 : vector<1x128xf32>
    %18 = arith.mulf %13, %13 : vector<8x128xf32>
    %cst_15 = arith.constant dense<0.000000e+00> : vector<128xf32>
    %19 = vector.multi_reduction <add>, %18, %cst_15 [0] : vector<8x128xf32> to vector<128xf32>
    %20 = vector.shape_cast %19 : vector<128xf32> to vector<1x128xf32>
    %cst_16 = arith.constant 8.000000e+00 : f32
    %21 = vector.broadcast %cst_16 : f32 to vector<1x128xf32>
    %22 = arith.divf %20, %21 : vector<1x128xf32>
    %23 = arith.mulf %17, %17 : vector<1x128xf32>
    %24 = arith.subf %22, %23 : vector<1x128xf32>
    %cst_17 = arith.constant 0.000000e+00 : f32
    %25 = vector.broadcast %cst_17 : f32 to vector<1x128xf32>
    %26 = arith.maximumf %24, %25 : vector<1x128xf32>
    %cst_18 = arith.constant 9.99999974E-6 : f32
    %27 = vector.broadcast %cst_18 : f32 to vector<1x128xf32>
    %28 = arith.addf %26, %27 : vector<1x128xf32>
    %29 = math.rsqrt %28 : vector<1x128xf32>
    %30 = arith.mulf %11, %29 : vector<1x128xf32>
    %31 = arith.mulf %17, %30 : vector<1x128xf32>
    %32 = arith.subf %12, %31 : vector<1x128xf32>
    %33 = vector.broadcast %30 : vector<1x128xf32> to vector<8x128xf32>
    %34 = arith.mulf %13, %33 : vector<8x128xf32>
    %35 = vector.broadcast %32 : vector<1x128xf32> to vector<8x128xf32>
    %36 = arith.addf %34, %35 : vector<8x128xf32>
    %c0_19 = arith.constant 0 : index
    %c0_20 = arith.constant 0 : index
    %37 = vector.load %arg7[%c0_19, %c0_20] : memref<16x128xf32, #tpu.memory_space<vmem>>, vector<8x128xf32>
    tpu.vector_store %arg7[%c0_19, %c0_20], %36 {strides = array<i32>} : memref<16x128xf32, #tpu.memory_space<vmem>>, vector<8x128xf32>,
    %38 = vector.extract_strided_slice %10 {offsets = [8, 0], sizes = [8, 128], strides = [1, 1]} : vector<16x128xf32> to vector<8x128xf32>
    %cst_21 = arith.constant dense<0.000000e+00> : vector<128xf32>
    %39 = vector.multi_reduction <add>, %38, %cst_21 [0] : vector<8x128xf32> to vector<128xf32>
    %40 = vector.shape_cast %39 : vector<128xf32> to vector<1x128xf32>
    %cst_22 = arith.constant 8.000000e+00 : f32
    %41 = vector.broadcast %cst_22 : f32 to vector<1x128xf32>
    %42 = arith.divf %40, %41 : vector<1x128xf32>
    %43 = arith.mulf %38, %38 : vector<8x128xf32>
    %cst_23 = arith.constant dense<0.000000e+00> : vector<128xf32>
    %44 = vector.multi_reduction <add>, %43, %cst_23 [0] : vector<8x128xf32> to vector<128xf32>
    %45 = vector.shape_cast %44 : vector<128xf32> to vector<1x128xf32>
    %cst_24 = arith.constant 8.000000e+00 : f32
    %46 = vector.broadcast %cst_24 : f32 to vector<1x128xf32>
    %47 = arith.divf %45, %46 : vector<1x128xf32>
    %48 = arith.mulf %42, %42 : vector<1x128xf32>
    %49 = arith.subf %47, %48 : vector<1x128xf32>
    %cst_25 = arith.constant 0.000000e+00 : f32
    %50 = vector.broadcast %cst_25 : f32 to vector<1x128xf32>
    %51 = arith.maximumf %49, %50 : vector<1x128xf32>
    %cst_26 = arith.constant 9.99999974E-6 : f32
    %52 = vector.broadcast %cst_26 : f32 to vector<1x128xf32>
    %53 = arith.addf %51, %52 : vector<1x128xf32>
    %54 = math.rsqrt %53 : vector<1x128xf32>
    %55 = arith.mulf %11, %54 : vector<1x128xf32>
    %56 = arith.mulf %42, %55 : vector<1x128xf32>
    %57 = arith.subf %12, %56 : vector<1x128xf32>
    %58 = vector.broadcast %55 : vector<1x128xf32> to vector<8x128xf32>
    %59 = arith.mulf %38, %58 : vector<8x128xf32>
    %60 = vector.broadcast %57 : vector<1x128xf32> to vector<8x128xf32>
    %61 = arith.addf %59, %60 : vector<8x128xf32>
    %c8 = arith.constant 8 : index
    %c0_27 = arith.constant 0 : index
    %62 = vector.load %arg7[%c8, %c0_27] : memref<16x128xf32, #tpu.memory_space<vmem>>, vector<8x128xf32>
    tpu.vector_store %arg7[%c8, %c0_27], %61 {strides = array<i32>} : memref<16x128xf32, #tpu.memory_space<vmem>>, vector<8x128xf32>,
    return
  }
  func.func @transform_0(%arg0: i32) -> (i32, i32) {
    %c0_i32 = arith.constant 0 : i32
    %c0_i32_0 = arith.constant 0 : i32
    return %arg0, %c0_i32 : i32, i32
  }
  func.func @transform_1(%arg0: i32) -> (i32, i32) {
    %c0_i32 = arith.constant 0 : i32
    %c0_i32_0 = arith.constant 0 : i32
    %c0_i32_1 = arith.constant 0 : i32
    return %c0_i32, %c0_i32_0 : i32, i32
  }
  func.func @transform_2(%arg0: i32) -> (i32, i32) {
    %c0_i32 = arith.constant 0 : i32
    %c0_i32_0 = arith.constant 0 : i32
    %c0_i32_1 = arith.constant 0 : i32
    return %c0_i32, %c0_i32_0 : i32, i32
  }
  func.func @transform_3(%arg0: i32) -> (i32, i32) {
    %c0_i32 = arith.constant 0 : i32
    %c0_i32_0 = arith.constant 0 : i32
    %c0_i32_1 = arith.constant 0 : i32
    return %c0_i32, %c0_i32_0 : i32, i32
  }
  func.func @transform_4(%arg0: i32) -> (i32, i32) {
    %c0_i32 = arith.constant 0 : i32
    %c0_i32_0 = arith.constant 0 : i32
    %c0_i32_1 = arith.constant 0 : i32
    return %c0_i32, %c0_i32_0 : i32, i32
  }
  func.func @transform_5(%arg0: i32) -> (i32, i32) {
    %c0_i32 = arith.constant 0 : i32
    %c0_i32_0 = arith.constant 0 : i32
    %c0_i32_1 = arith.constant 0 : i32
    return %c0_i32, %c0_i32_0 : i32, i32
  }
  func.func @transform_6(%arg0: i32) -> (i32, i32) {
    %c0_i32 = arith.constant 0 : i32
    %c0_i32_0 = arith.constant 0 : i32
    return %arg0, %c0_i32 : i32, i32
  }
}

</mosaic_0001>

<bundles_post_ra>
// kernel: encoder_forward.1
= control target key start
LH: loop header
LB: loop body
LE: loop exit
PB: predicated region body
PF: predicated region fallthrough
CT: control target
= control target key end

     0   :  { %11 = vsyncpa [#allocation3], 0  ;;  %s1027_s0 = inlined_call_operand.vmem [shape: bf16[32,32], index: 0, kind: input, shape index: {}]   ;;  %s1028_s1 = inlined_call_operand.vmem [shape: bf16[32,128], index: 1, kind: input, shape index: {}]   ;;  %s1029_s2 = inlined_call_operand.vmem [shape: f32[1,128], index: 2, kind: input, shape index: {}]   ;;  %s1030_s3 = inlined_call_operand.hbm [shape: bf16[128,128], index: 3, kind: input, shape index: {}]   ;;  %s1031_s4 = inlined_call_operand.vmem [shape: f32[1,128], index: 4, kind: input, shape index: {}]   ;;  %s1032_s5 = inlined_call_operand.vmem [shape: f32[1,128], index: 5, kind: input, shape index: {}]   ;;  %s1033_s6 = inlined_call_operand.hbm [shape: f32[32,128], index: 6, kind: output, shape index: {}]  }
   0x1   :  { %12 = vsyncpa [#allocation4], 0 }
   0x2   :  { %14 = vsyncpa [#allocation4 + $0x1], 0  ;;  %s893_s21 = smov 0   ;;  %s895_s22 = smov 0  }
   0x3   :  { %s897_s23 = smov 0   ;;  %s899_s24 = smov 0  }
   0x4 LB: > { %s914_s25 = sadd.s32 4294967295, %s848_s24   ;;  %s619_s26 = sadd.s32 4294967294, %s848_s24   ;;  %s848_s24 = sphi %s899_s24, %s1041_s24   ;;  %s844_s23 = sphi %s897_s23, %s1040_s23   ;;  %s840_s22 = sphi %s895_s22, %s1039_s22   ;;  %s836_s21 = sphi %s893_s21, %s1038_s21  }
   0x5   : > { %s918_s27 = sadd.s32 1, %s848_s24   ;;  %s158_s28 = sadd.s32 1, %s844_s23 }
   0x6   : > { %s155_s29 = ssub.s32 %s848_s24, %s918_s27  ;;  %p168_p0 = scmp.ne.s32.totalorder %s844_s23, %s840_s22 }
   0x7   : > { %p156_p1 = scmp.eq.s32.totalorder %s155_s29, 0  ;;  %p169_p2 = scmp.eq.s32.totalorder %s914_s25, 1 }
   0x8   : > { %p174_p3 = scmp.ne.s32.totalorder %s840_s22, %s836_s21  ;;  %p175_p4 = scmp.eq.s32.totalorder %s619_s26, 1 }
   0x9   : > { %s929_s30 = scalar_select %p156_p1, %s844_s23, %s158_s28  }
   0xa   : > { %p931_p5 = por %p169_p2, %p168_p0  ;;  %p935_p6 = por %p175_p4, %p174_p3 }
   0xb   : > { %p620_p7 = scmp.ge.s32.totalorder %s848_s24, 1  ;;  %p182_p8 = scmp.lt.s32.totalorder %s848_s24, 3 }
   0xc   : > { %s1035_s8 = scalar_select %p935_p6, 1, 0 }
   0xd   : > { %p701_p9 = scmp.eq.s32.totalorder %s914_s25, 0  ;;  %p942_p10 = pnand %p620_p7, %p182_p8 }
   0xe   : > { %s850_s10 = smov [#allocation2]  }
   0xf   : > { %s200_s11 = sshll.u32 %s850_s10, 4  ;;  %p693_p11 = pneg %p942_p10  ;;  %s201_s11 = int_to_ptr.vmem [resolvable:$true] %s200_s11 }
  0x10   : > { %s769_s12 = scalar_lea.vmem %s201_s11, 1024  ;;  %p777_p3 = scmp.lt.s32.totalorder %s201_s11, %s201_s11 }
  0x11   : > { %p694_p12 = pnand %p701_p9, %p693_p11  ;;  %p770_p0 = scmp.ne.s32.totalorder %s201_s11, %s769_s12 }
  0x12   : > { %p778_p4 = scmp.lt.s32.totalorder %s769_s12, %s769_s12 }
  0x13   : > { %p760_p13 = pneg %p694_p12 }
  0x14   : > { %p779_p6 = por %p778_p4, %p777_p3 }
  0x15   : > { %p772_p1 = pnand %p770_p0, %p760_p13 }
  0x17   : > { %p773_p2 = pneg %p772_p1 }
  0x19   : > { %p780_p7 = pnand %p779_p6, %p773_p2 }
  0x1b   : > { %783 = shalt.err (!%p780_p7)
}
  0x1c   : > { %s851_s13 = smov 64   ;;  %s852_s14 = smov 4  }
  0x1d   : > { %696 = dma.hbm_to_vmem [thread:$0]  (!%p694_p12), %s1030_s3, 1024, %s201_s11, [#allocation3], %s851_s13, %s851_s13, %s852_s14  }
  0x1e   : > { %231 = sbr.rel (%p942_p10) target bundleno = 506 (0x1fa), region = 44 }
  0x23   : > { %827 = dma.done.wait (%p701_p9), [#allocation3], 1024  }
  0x24   : > { %829 = vsyncadd (%p701_p9), [#allocation3], 4294966272  ;;  %s626_s17 = sshll.u32 %s914_s25, 1  ;;  %v853_v0 = vmov 0.0   ;;  %vm854_vm0 = vmmov 0   ;;  %v743_v1 = vld [vmem:[%s1028_s1 + $0x8] sm:$0xff]  }
  0x25   : > { %659 = vmatprep.subr.bf16.mxu0 %v853_v0  ;;  %663 = vmatprep.mubr.msk.bf16.mxu0 %vm854_vm0, %v853_v0  ;;  %p262_p6 = scmp.lt.s32.totalorder %s626_s17, 3  ;;  %v744_v2 = vld [vmem:[%s1028_s1] sm:$0xff]   ;;  %v746_v3 = vld [vmem:[#allocation2 + $0x38] sm:$0xff]   ;;  %v747_v5 = vld [vmem:[#allocation2 + $0x30] sm:$0xff]   ;;  %vm299_vm1 = vcmask 261120   ;;  %s258_s15 = sand.u32 1, %s840_s22  }
  0x26   : > { %667 = vmatprep.subr.bf16.mxu1 %v853_v0  ;;  %683 = vmatprep.mubr.msk.bf16.mxu1 %vm854_vm0, %v853_v0  ;;  %v748_v6 = vld [vmem:[#allocation2 + $0x28] sm:$0xff]   ;;  %v749_v7 = vld [vmem:[#allocation2 + $0x20] sm:$0xff]   ;;  %v750_v8 = vld [vmem:[#allocation2 + $0x18] sm:$0xff]   ;;  %s646_s19 = sshll.u32 %s914_s25, 8  ;;  %s987_s10 = scalar_lea.sflag [#allocation4], %s258_s15 }
  0x27   : > { %s1043_s17 = smov (!%p262_p6, %s626_s17), 3  ;;  %660 = vmatpush3.bf16.msra.mxu0 %v743_v1  ;;  %668 = vmatpush3.bf16.msra.mxu1 %v746_v3  ;;  %v751_v9 = vld [vmem:[#allocation2 + $0x10] sm:$0xff]   ;;  %v752_v10 = vld [vmem:[#allocation2 + $0x8] sm:$0xff]   ;;  %v753_v11 = vld [vmem:[#allocation2] sm:$0xff]   ;;  %s983_s9 = scalar_lea.hbm %s1033_s6, %s646_s19 }
  0x28   : > { %s627_s18 = sshll.u32 %s1043_s17, 2  ;;  %661 = vmatprep.subr.bf16.mxu0 %v853_v0  ;;  %669 = vmatprep.subr.bf16.mxu1 %v853_v0  ;;  %v628_v12 = vld [vmem:[%s1029_s2] ss:$0 sm:$0xff]  ;;  %s855_s11 = smov [#allocation5]  }
  0x29   : > { %s265_s29 = scalar_lea.vmem %s1027_s0, %s627_s18  ;;  %s625_s18 = sshll.u32 %s258_s15, 4 }
  0x2a   : > { %v745_v4 = vld [vmem:[%s265_s29] sm:$0xff]   ;;  %s260_s20 = scalar_lea.vmem [#allocation5], %s625_s18  ;;  %s788_s12 = sshll.u32 %s855_s11, 4  ;;  %s789_s12 = int_to_ptr.vmem [resolvable:$false] %s788_s12 }
  0x2b   : > { %662 = vmatpush3.bf16.msra.mxu0 %v744_v2  ;;  %670 = vmatpush3.bf16.msra.mxu1 %v747_v5  ;;  %v452_v2 = vld [vmem:[%s1031_s4] sm:$0x1]  ;;  %s545_s26 = sshll.u32 %s260_s20, 4  ;;  %s790_s13 = scalar_lea.vmem %s789_s12, 512  ;;  %s985_s26 = int_to_ptr.vmem [resolvable:$true] %s545_s26 }
  0x2c   : > { %671 = vmatprep.subr.bf16.mxu1 %v853_v0  ;;  %s784_s25 = scalar_lea.vmem %s985_s26, 256  ;;  %p791_p11 = scmp.lt.s32.totalorder %s985_s26, %s789_s12 }
  0x2d   : > { %p785_p8 = scmp.ne.s32.totalorder %s985_s26, %s784_s25  ;;  %p792_p12 = scmp.lt.s32.totalorder %s790_s13, %s784_s25 }
  0x2e   : > { %664 = vmatmul.mubr.msk.bf16.vlgmr.msra.gmra.mxu0 %vm299_vm1, %v745_v4 }
  0x2f   : > { %672 = vmatpush3.bf16.msra.mxu1 %v748_v6  ;;  %v453_v6 = vld [vmem:[%s1032_s5] sm:$0x1]  ;;  %p786_p9 = pnand %p785_p8, %p931_p5  ;;  %p793_p13 = por %p792_p12, %p791_p11 }
  0x30   : > { %673 = vmatprep.subr.bf16.mxu1 %v853_v0 }
  0x31   : > { %p787_p10 = pneg %p786_p9 }
  0x33   : > { %674 = vmatpush3.bf16.msra.mxu1 %v749_v7  ;;  %p794_p0 = pnand %p793_p13, %p787_p10 }
  0x34   : > { %675 = vmatprep.subr.bf16.mxu1 %v853_v0 }
  0x37   : > { %676 = vmatpush3.bf16.msra.mxu1 %v750_v8 }
  0x38   : > { %677 = vmatprep.subr.bf16.mxu1 %v853_v0 }
  0x3b   : > { %678 = vmatpush3.bf16.msra.mxu1 %v751_v9 }
  0x3c   : > { %679 = vmatprep.subr.bf16.mxu1 %v853_v0 }
  0x3f   : > { %680 = vmatpush3.bf16.msra.mxu1 %v752_v10 }
  0x40   : > { %681 = vmatprep.subr.bf16.mxu1 %v853_v0  ;;  %v479_v0 = vlaneseq }
  0x42   : > { %v480_v1 = vshrl.u32 %v479_v0, 7 }
  0x43   : > { %682 = vmatpush3.bf16.msra.mxu1 %v753_v11 }
  0x44   : > { %v481_v3 = vsub.s32 0, %v480_v1 }
  0xee   : > { %v337_v13 = vpop.f32.mrf.mxu0 }
  0xef   : > { %v338_v15 = vadd.f32 %v628_v12, %v337_v13 }
  0xf0   : > { %v665_v14 = vpop.f32.mrf.mxu0 }
  0xf1   : > { %v344_v19 = vmax.f32 %v338_v15, 0.0 }
  0xf2   : > { %v340_v16 = vpop.f32.mrf.mxu0 }
  0xf3   : > { %v341_v17 = vadd.f32 %v628_v12, %v340_v16 }
  0xf4   : > { %v666_v18 = vpop.f32.mrf.mxu0 }
  0xf5   : > { %v345_v20 = vmax.f32 %v341_v17, 0.0 }
  0xf7   : > { %v346_v21 = vpack.c.bf16 %v345_v20, %v344_v19 }
  0xf9   : > { %684 = vmatmul.mubr.bf16.vlgmr.msra.gmra.mxu1 %v346_v21 }
 0x1b9   : > { %v445_v22 = vpop.f32.mrf.mxu1 }
 0x1ba   : > { %v454_v23 = vrot.slane %v445_v22, 4  ;;  %v462_v24 = vmul.f32 %v445_v22, %v445_v22 }
 0x1bb   : > { %v685_v25 = vpop.f32.mrf.mxu1 }
 0x1bc   : > { %v455_v26 = vadd.f32 %v454_v23, %v445_v22  ;;  %v463_v27 = vrot.slane %v462_v24, 4 }
 0x1bd   : > { %v448_v28 = vpop.f32.mrf.mxu1 }
 0x1be   : > { %v456_v29 = vrot.slane %v455_v26, 2  ;;  %v464_v30 = vadd.f32 %v463_v27, %v462_v24  ;;  %v493_v31 = vrot.slane %v448_v28, 4  ;;  %v500_v32 = vmul.f32 %v448_v28, %v448_v28 }
 0x1bf   : > { %v686_v33 = vpop.f32.mrf.mxu1 }
 0x1c0   : > { %v457_v34 = vadd.f32 %v456_v29, %v455_v26  ;;  %v465_v35 = vrot.slane %v464_v30, 2  ;;  %v494_v36 = vadd.f32 %v493_v31, %v448_v28  ;;  %v501_v37 = vrot.slane %v500_v32, 4 }
 0x1c2   : > { %v458_v38 = vrot.slane %v457_v34, 1  ;;  %v466_v39 = vadd.f32 %v465_v35, %v464_v30  ;;  %v495_v40 = vrot.slane %v494_v36, 2  ;;  %v502_v41 = vadd.f32 %v501_v37, %v500_v32 }
 0x1c4   : > { %v459_v42 = vadd.f32 %v458_v38, %v457_v34  ;;  %v467_v43 = vrot.slane %v466_v39, 1  ;;  %v496_v44 = vadd.f32 %v495_v40, %v494_v36  ;;  %v503_v45 = vrot.slane %v502_v41, 2 }
 0x1c6   : > { %v461_v46 = vmul.f32 0.125, %v459_v42  ;;  %v468_v47 = vadd.f32 %v467_v43, %v466_v39  ;;  %v497_v48 = vrot.slane %v496_v44, 1  ;;  %v504_v49 = vadd.f32 %v503_v45, %v502_v41 }
 0x1c8   : > { %v469_v50 = vmul.f32 0.125, %v468_v47  ;;  %v470_v51 = vmul.f32 %v461_v46, %v461_v46  ;;  %v498_v52 = vadd.f32 %v497_v48, %v496_v44  ;;  %v505_v53 = vrot.slane %v504_v49, 1 }
 0x1ca   : > { %v471_v54 = vsub.f32 %v469_v50, %v470_v51  ;;  %v499_v55 = vmul.f32 0.125, %v498_v52  ;;  %v506_v56 = vadd.f32 %v505_v53, %v504_v49 }
 0x1cc   : > { %v472_v57 = vmax.f32 %v471_v54, 0.0  ;;  %v507_v58 = vmul.f32 0.125, %v506_v56  ;;  %v508_v59 = vmul.f32 %v499_v55, %v499_v55 }
 0x1ce   : > { %v473_v60 = vadd.f32 1e-05, %v472_v57  ;;  %v509_v61 = vsub.f32 %v507_v58, %v508_v59 }
 0x1d0   : > { %754 = vrsqrt.f32 %v473_v60  ;;  %v510_v62 = vmax.f32 %v509_v61, 0.0 }
 0x1d2   : > { %v511_v63 = vadd.f32 1e-05, %v510_v62 }
 0x1d4   : > { %756 = vrsqrt.f32 %v511_v63 }
 0x1dd   : > { %v755_v4 = vpop.eup %754 }
 0x1de   : > { %v475_v5 = vmul.f32 %v755_v4, %v452_v2 }
 0x1e0   : > { %v476_v7 = vmul.f32 %v475_v5, %v461_v46  ;;  %v482_v8 = vrot.slane %v475_v5, %v481_v3 }
 0x1e1   : > { %v757_v9 = vpop.eup %756 }
 0x1e2   : > { %v477_v10 = vsub.f32 %v453_v6, %v476_v7  ;;  %v513_v11 = vmul.f32 %v757_v9, %v452_v2  ;;  %v484_v12 = vmul.f32 %v482_v8, %v445_v22 }
 0x1e4   : > { %v489_v13 = vrot.slane %v477_v10, %v481_v3  ;;  %v514_v14 = vmul.f32 %v513_v11, %v499_v55  ;;  %v520_v15 = vrot.slane %v513_v11, %v481_v3 }
 0x1e6   : > { %v491_v16 = vadd.f32 %v489_v13, %v484_v12  ;;  %v515_v17 = vsub.f32 %v453_v6, %v514_v14  ;;  %v522_v18 = vmul.f32 %v520_v15, %v448_v28 }
 0x1e8   : > { %492 = vst [vmem:[%s260_s20] sm:$0xff] %v491_v16  ;;  %v527_v19 = vrot.slane %v515_v17, %v481_v3 }
 0x1ea   : > { %v529_v20 = vadd.f32 %v527_v19, %v522_v18 }
 0x1ec   : > { %530 = vst [vmem:[%s260_s20 + $0x8] sm:$0xff] %v529_v20 }
 0x1ed   : > { %797 = shalt.err (!%p794_p0)
}
 0x1ee   : > { %s798_s14 = scalar_lea.hbm %s983_s9, 256  ;;  %s802_s17 = scalar_lea.hbm %s1033_s6, 512 }
 0x1ef   : > { %p799_p1 = scmp.ne.s32.totalorder %s983_s9, %s798_s14  ;;  %p803_p4 = scmp.lt.s32.totalorder %s983_s9, %s1033_s6 }
 0x1f0   : > { %p804_p7 = scmp.lt.s32.totalorder %s802_s17, %s798_s14 }
 0x1f1   : > { %p800_p2 = pnand %p799_p1, %p931_p5 }
 0x1f2   : > { %p805_p6 = por %p804_p7, %p803_p4 }
 0x1f3   : > { %p801_p3 = pneg %p800_p2 }
 0x1f5   : > { %p806_p8 = pnand %p805_p6, %p801_p3 }
 0x1f7   : > { %809 = shalt.err (!%p806_p8)
}
 0x1f8   : > { %s856_s20 = smov 128   ;;  %s857_s28 = smov 8  }
 0x1f9   : > { %691 = dma.vmem_to_hbm [thread:$0]  (%p931_p5), %s985_s26, 256, %s983_s9, %s987_s10, %s856_s20, %s856_s20, %s857_s28  }
 0x1fa PF: > { %p703_p9 = scmp.ge.s32.totalorder %s848_s24, 2  ;;  %s560_s29 = sand.u32 1, %s836_s21  }
 0x1fb   : > { %p1037_p10 = scmp.ne.s32.totalorder %s1035_s8, 0  ;;  %s561_s25 = scalar_lea.sflag [#allocation4], %s560_s29 }
 0x1fd   : > { %p698_p11 = pnand %p703_p9, %p1037_p10 }
 0x1ff   : > { %p699_p12 = pneg %p698_p11 }
 0x201   : > { %831 = dma.done.wait (%p699_p12), %s561_s25, 256  }
 0x202   : > { %833 = vsyncadd (%p699_p12), %s561_s25, 4294967040  ;;  %p17_p13 = scmp.ge.s32.totalorder %s918_s27, 4   ;;  %s1038_s21 = smov %s840_s22 }
 0x203   : > { %s1039_s22 = smov %s844_s23  ;;  %s1040_s23 = smov %s929_s30 }
 0x204   : > { %s1041_s24 = smov %s918_s27  ;;  %19 = sbr.rel (!%p17_p13) target bundleno = 4 (0x4), region = 84 }
 0x209   :  { %566 = vsyncpa [#allocation3], 1 }
 0x20a   :  { %568 = vsyncpa [#allocation3 + $0x1], 1 }
 0x20b   :  { %569 = vsyncpa [#allocation4], 1 }
 0x20c   :  { %571 = vsyncpa [#allocation4 + $0x1], 1 }

</bundles_post_ra>
